<compile_context>
chip_gen: v6e
topology: v6e:2x2x1
jax: 0.10.0
libtpu: 0.0.40
codegen_flags: <defaults>
</compile_context>

<pallas_src>
import jax
import jax.numpy as jnp
from jax.experimental import pallas as pl
from jax.experimental.pallas import tpu as pltpu


def _round_up(x, m):
    return (x + m - 1) // m * m


def _patch_embed_kernel(x_ref, w_ref, b_ref, o_ref):
    # x_ref: (TM, K) patch tile, w_ref: (K, D) resident weight,
    # b_ref: (1, D) resident bias (f32), o_ref: (TM, D) output tile.
    acc = jnp.dot(x_ref[...], w_ref[...], preferred_element_type=jnp.float32)
    o_ref[...] = (acc + b_ref[...]).astype(o_ref.dtype)


def patch_embed_forward(x, weight, bias, patch_size, flatten=True, *,
                        compute_dtype=None, block_m=2048,
                        vmem_budget_bytes=24 * 1024 * 1024):
    """Pallas implementation of PatchEmbed.forward.

    Args:
      x:       (B, C, H, W) NCHW input, like the PyTorch module.
      weight:  (D, C, pH, pW) Conv2d weight (OIHW layout).
      bias:    (D,) Conv2d bias.
      patch_size: int or (pH, pW).
      flatten: True -> (B, N, D); False -> (B, D, Hp, Wp).
      compute_dtype: optional GEMM/output dtype (e.g. jnp.bfloat16) to halve
        HBM traffic if the surrounding model tolerates it; None keeps x.dtype.
        Accumulation is always f32 on the MXU.
      block_m: max patch-tile size along M = B*N.
      vmem_budget_bytes: target double-buffered VMEM working set; the actual
        requirement is passed explicitly via vmem_limit_bytes.
    """
    if isinstance(patch_size, (tuple, list)):
        ph, pw = int(patch_size[0]), int(patch_size[1])
    else:
        ph = pw = int(patch_size)

    B, C, H, W = x.shape
    D = weight.shape[0]
    Hp, Wp = H // ph, W // pw
    N = Hp * Wp
    M = B * N
    K = C * ph * pw

    cdt = jnp.dtype(compute_dtype) if compute_dtype is not None else jnp.dtype(x.dtype)
    out_dtype = cdt

    # ---- patchify: (B, C, H, W) -> (M, K), K flattened in (c, i, j) order.
    # The dtype cast for the bf16 path is fused into this same XLA pass.
    # TODO(synk): fuse this transpose into the kernel's input DMA (grid over
    # (B, Hp) with a (1, C, ph, W) block + in-kernel relayout). At real PixArt
    # sizes (K=16, D=1152) it is only a few percent of the kernel's own HBM
    # traffic, and the in-kernel relayout of sub-lane-sized tiles is a Mosaic
    # lowering risk, so it stays in the wrapper for now.
    if H != Hp * ph or W != Wp * pw:
        x = x[:, :, :Hp * ph, :Wp * pw]            # Conv2d drops the remainder
    xp = x.astype(cdt).reshape(B, C, Hp, ph, Wp, pw)
    xp = jnp.transpose(xp, (0, 2, 4, 1, 3, 5)).reshape(M, K)

    w2d = weight.astype(cdt).reshape(D, K).T       # (K, D), (c, i, j)-major rows
    b2d = bias.reshape(1, D).astype(jnp.float32)   # bias added in f32

    x_item = cdt.itemsize
    o_item = jnp.dtype(out_dtype).itemsize

    # ---- row alignment: sublane packing is 8 / 16 / 32 rows for 4/2/1-byte.
    align = max(8, 32 // min(x_item, o_item))

    # ---- tile size along M: biggest aligned TM whose double-buffered working
    #      set fits the budget, capped so the grid has >= 2 steps (v7x splits
    #      the "parallel" M axis across its two TensorCores).
    resident = 2 * K * D * x_item + 2 * D * 4      # weight + bias buffers
    per_row = 2 * (K * x_item + D * o_item)        # double-buffered in/out tiles
    avail = max(vmem_budget_bytes - resident, align * per_row)
    tm_fit = (avail // per_row) // align * align
    tm_cap = _round_up(-(-M // 2), align)          # ceil(M/2), aligned
    TM = max(align, min(block_m, tm_fit, tm_cap) // align * align)
    grid = (pl.cdiv(M, TM),)                       # ragged last block, no M pad

    vmem_need = 2 * TM * (K * x_item + D * o_item) + resident
    vmem_limit = int(min(max(vmem_need + (4 << 20), 16 << 20), 48 << 20))

    cost = pl.CostEstimate(
        flops=2 * M * K * D,
        transcendentals=0,
        bytes_accessed=(M * K + K * D) * x_item + D * 4 + M * D * o_item)

    # NOTE: weight/bias are only DMA'd once (constant block index). We skip
    # pipeline_mode=pl.Buffered(1) for them to minimize compile risk; their
    # double-buffer VMEM is already accounted for in the TM sizing above.
    out = pl.pallas_call(
        _patch_embed_kernel,
        out_shape=jax.ShapeDtypeStruct((M, D), out_dtype),   # no pad, no slice
        grid_spec=pl.GridSpec(
            grid=grid,
            in_specs=[
                pl.BlockSpec((TM, K), lambda i: (i, 0)),   # patch tiles
                pl.BlockSpec((K, D), lambda i: (0, 0)),    # weight, VMEM-resident
                pl.BlockSpec((1, D), lambda i: (0, 0)),    # bias, VMEM-resident
            ],
            out_specs=pl.BlockSpec((TM, D), lambda i: (i, 0)),
        ),
        compiler_params=pltpu.CompilerParams(
            dimension_semantics=("parallel",),             # shard M across TCs
            vmem_limit_bytes=vmem_limit),
        cost_estimate=cost,
    )(xp, w2d, b2d)

    out = out.reshape(B, N, D)                     # == flatten(2).transpose(1, 2)
    if not flatten:
        # TODO(synk): emit (B, D, Hp, Wp) directly from the kernel (transpose
        # the (TM, D) tile in VMEM) to save this extra HBM pass; flatten=True
        # is the path PixArt uses, so the plain transpose is kept here.
        out = jnp.transpose(out.reshape(B, Hp, Wp, D), (0, 3, 1, 2))
    # norm = nn.Identity() in the reference config -> no-op
    return out


def _reference_conv(x, weight, bias, patch_size):
    if isinstance(patch_size, (tuple, list)):
        ph, pw = patch_size
    else:
        ph = pw = int(patch_size)
    ref = jax.lax.conv_general_dilated(
        x, weight, window_strides=(ph, pw), padding="VALID",
        dimension_numbers=("NCHW", "OIHW", "NCHW"))
    return ref + bias[None, :, None, None]


def _reference(x, weight, bias, patch_size):
    ref = _reference_conv(x, weight, bias, patch_size)
    B, D = ref.shape[0], ref.shape[1]
    return ref.reshape(B, D, -1).transpose(0, 2, 1)


if __name__ == "__main__":
    key = jax.random.PRNGKey(0)
    kx, kw, kb, kx2, kw2 = jax.random.split(key, 5)

    # Case 1: small, module-consistent shapes (single tile; D % 128 != 0 ->
    # full-D masked-store output path). Both flatten modes.
    B, C, H, W = 2, 4, 16, 16
    patch_size, embed_dim = 8, 32
    x = jax.random.normal(kx, (B, C, H, W), dtype=jnp.float32)
    weight = jax.random.normal(kw, (embed_dim, C, patch_size, patch_size),
                               dtype=jnp.float32) * 0.02
    bias = jax.random.normal(kb, (embed_dim,), dtype=jnp.float32) * 0.02

    out = jax.block_until_ready(
        patch_embed_forward(x, weight, bias, patch_size, flatten=True))
    ref = _reference(x, weight, bias, patch_size)
    assert out.shape == (B, (H // patch_size) * (W // patch_size), embed_dim)
    assert jnp.allclose(out, ref, atol=1e-4, rtol=1e-4)

    out_nf = jax.block_until_ready(
        patch_embed_forward(x, weight, bias, patch_size, flatten=False))
    ref_nf = _reference_conv(x, weight, bias, patch_size)
    assert out_nf.shape == ref_nf.shape
    assert jnp.allclose(out_nf, ref_nf, atol=1e-4, rtol=1e-4)

    # Case 2: multi-tile grid with a RAGGED last block (M=512, TM=96 -> 6
    # steps, last block masked on write), weight-resident path, f32.
    B2, C2, H2, W2, p2 = 2, 4, 64, 64, 4
    x2 = jax.random.normal(kx2, (B2, C2, H2, W2), dtype=jnp.float32)
    w2 = jax.random.normal(kw2, (embed_dim, C2, p2, p2), dtype=jnp.float32) * 0.02
    out2 = jax.block_until_ready(
        patch_embed_forward(x2, w2, bias, p2, flatten=True, block_m=96))
    ref2 = _reference(x2, w2, bias, p2)
    assert out2.shape == (B2, (H2 // p2) * (W2 // p2), embed_dim)
    assert jnp.allclose(out2, ref2, atol=1e-4, rtol=1e-4)

    # Case 3: bf16 compute path (halves HBM traffic; f32 MXU accumulation),
    # same ragged multi-tile grid.
    out3 = jax.block_until_ready(
        patch_embed_forward(x2, w2, bias, p2, flatten=True, block_m=96,
                            compute_dtype=jnp.bfloat16))
    assert out3.dtype == jnp.bfloat16
    assert jnp.allclose(out3.astype(jnp.float32), ref2, atol=5e-2, rtol=5e-2)

    print("KERNEL_OK")
</pallas_src>

<mosaic_0001>
module attributes {stable_mosaic.version = 11 : i64} {
  func.func @_patch_embed_kernel(%arg0: i32, %arg1: memref<8x256xf32, #tpu.memory_space<vmem>>, %arg2: memref<256x32xf32, #tpu.memory_space<vmem>>, %arg3: memref<1x32xf32, #tpu.memory_space<vmem>>, %arg4: memref<8x32xf32, #tpu.memory_space<vmem>>) attributes {dimension_semantics = [#tpu.dimension_semantics<parallel>], iteration_bounds = array<i64: 1>, scalar_prefetch = 0 : i64, scratch_operands = 0 : i64, tpu.core_type = #tpu.core_type<tc>, window_params = [{transform_indices = @transform_0, window_bounds = array<i64: 8, 256>}, {pipeline_mode = #tpu.pipeline_mode<synchronous>, transform_indices = @transform_1, window_bounds = array<i64: 256, 32>}, {pipeline_mode = #tpu.pipeline_mode<synchronous>, transform_indices = @transform_2, window_bounds = array<i64: 1, 32>}, {transform_indices = @transform_3, window_bounds = array<i64: 8, 32>}]} {
    %c0 = arith.constant 0 : index
    %c0_0 = arith.constant 0 : index
    %0 = vector.load %arg1[%c0, %c0_0] : memref<8x256xf32, #tpu.memory_space<vmem>>, vector<8x256xf32>
    %c0_1 = arith.constant 0 : index
    %c0_2 = arith.constant 0 : index
    %1 = vector.load %arg2[%c0_1, %c0_2] : memref<256x32xf32, #tpu.memory_space<vmem>>, vector<256x32xf32>
    %cst = arith.constant dense<0.000000e+00> : vector<8x32xf32>
    %2 = tpu.matmul %0, %1, %cst {dimension_numbers = #tpu.dot_dimension_numbers<[1], [0], [0], [1], [0, 0, 1, 1], [], []>} : vector<8x256xf32>, vector<256x32xf32>, vector<8x32xf32> -> vector<8x32xf32>
    %c0_3 = arith.constant 0 : index
    %c0_4 = arith.constant 0 : index
    %3 = vector.load %arg3[%c0_3, %c0_4] : memref<1x32xf32, #tpu.memory_space<vmem>>, vector<1x32xf32>
    %4 = vector.broadcast %3 : vector<1x32xf32> to vector<8x32xf32>
    %5 = arith.addf %2, %4 : vector<8x32xf32>
    %c0_5 = arith.constant 0 : index
    %c0_6 = arith.constant 0 : index
    %6 = vector.load %arg4[%c0_5, %c0_6] : memref<8x32xf32, #tpu.memory_space<vmem>>, vector<8x32xf32>
    tpu.vector_store %arg4[%c0_5, %c0_6], %5 {strides = array<i32>} : memref<8x32xf32, #tpu.memory_space<vmem>>, vector<8x32xf32>,
    return
  }
  func.func @transform_0(%arg0: i32) -> (i32, i32) {
    %c0_i32 = arith.constant 0 : i32
    %c0_i32_0 = arith.constant 0 : i32
    return %arg0, %c0_i32 : i32, i32
  }
  func.func @transform_1(%arg0: i32) -> (i32, i32) {
    %c0_i32 = arith.constant 0 : i32
    %c0_i32_0 = arith.constant 0 : i32
    %c0_i32_1 = arith.constant 0 : i32
    return %c0_i32, %c0_i32_0 : i32, i32
  }
  func.func @transform_2(%arg0: i32) -> (i32, i32) {
    %c0_i32 = arith.constant 0 : i32
    %c0_i32_0 = arith.constant 0 : i32
    %c0_i32_1 = arith.constant 0 : i32
    return %c0_i32, %c0_i32_0 : i32, i32
  }
  func.func @transform_3(%arg0: i32) -> (i32, i32) {
    %c0_i32 = arith.constant 0 : i32
    %c0_i32_0 = arith.constant 0 : i32
    return %arg0, %c0_i32 : i32, i32
  }
}

</mosaic_0001>

<bundles_post_ra>
// kernel: tpu_custom_call.1
= control target key start
LH: loop header
LB: loop body
LE: loop exit
PB: predicated region body
PF: predicated region fallthrough
CT: control target
= control target key end

     0   :  { %s330_s0 = inlined_call_operand.vmem [shape: f32[8,256], index: 0, kind: input, shape index: {}]   ;;  %s331_s1 = inlined_call_operand.vmem [shape: f32[256,32], index: 1, kind: input, shape index: {}]   ;;  %s332_s2 = inlined_call_operand.vmem [shape: f32[1,32], index: 2, kind: input, shape index: {}]   ;;  %s333_s3 = inlined_call_operand.hbm [shape: f32[8,32], index: 3, kind: output, shape index: {}]  }
   0x1   :  { %v48_v0 = vld [vmem:[%s331_s1 + $0xf8] sm:$0xff]  ;;  %v47_v2 = vld [vmem:[%s331_s1 + $0xf0] sm:$0xff]  ;;  %v46_v4 = vld [vmem:[%s331_s1 + $0xe8] sm:$0xff] }
   0x2   :  { %v32_v1 = vld [vmem:[%s331_s1 + $0x78] sm:$0xff]  ;;  %143 = vmatprep.subr.mxu0 %v48_v0  ;;  %v31_v3 = vld [vmem:[%s331_s1 + $0x70] sm:$0xff]  ;;  %v30_v5 = vld [vmem:[%s331_s1 + $0x68] sm:$0xff] }
   0x3   :  { %144 = vmatpush3.msra.mxu0 %v32_v1  ;;  %v45_v6 = vld [vmem:[%s331_s1 + $0xe0] sm:$0xff]  ;;  %v44_v8 = vld [vmem:[%s331_s1 + $0xd8] sm:$0xff]  ;;  %v43_v10 = vld [vmem:[%s331_s1 + $0xd0] sm:$0xff] }
   0x4   :  { %145 = vmatprep.subr.mxu0 %v47_v2  ;;  %v29_v7 = vld [vmem:[%s331_s1 + $0x60] sm:$0xff]  ;;  %v28_v9 = vld [vmem:[%s331_s1 + $0x58] sm:$0xff]  ;;  %v27_v11 = vld [vmem:[%s331_s1 + $0x50] sm:$0xff] }
   0x5   :  { %146 = vmatpush3.msra.mxu0 %v31_v3  ;;  %v42_v12 = vld [vmem:[%s331_s1 + $0xc8] sm:$0xff] }
   0x6   :  { %147 = vmatprep.subr.mxu0 %v46_v4  ;;  %v16_v13 = vld [vmem:[%s330_s0 + $0x8] sm:$0xff] }
   0x7   :  { %148 = vmatpush3.msra.mxu0 %v30_v5  ;;  %v26_v14 = vld [vmem:[%s331_s1 + $0x48] sm:$0xff]  ;;  %120 = vmatprep.mubr.f32.mxu0 %v16_v13 }
   0x8   :  { %149 = vmatprep.subr.mxu0 %v45_v6 }
   0x9   :  { %150 = vmatpush3.msra.mxu0 %v29_v7 }
   0xa   :  { %151 = vmatprep.subr.mxu0 %v44_v8 }
   0xb   :  { %152 = vmatpush3.msra.mxu0 %v28_v9 }
   0xc   :  { %153 = vmatprep.subr.mxu0 %v43_v10 }
   0xd   :  { %8 = vsyncpa [#allocation3], 0  ;;  %154 = vmatpush3.msra.mxu0 %v27_v11  ;;  %v41_v15 = vld [vmem:[%s331_s1 + $0xc0] sm:$0xff]  ;;  %v40_v17 = vld [vmem:[%s331_s1 + $0xb8] sm:$0xff]  ;;  %s201_s28 = smov [#allocation2]   ;;  %vm126_vm0 = vcmask 261120  }
   0xe   :  { %155 = vmatprep.subr.mxu0 %v42_v12  ;;  %v25_v16 = vld [vmem:[%s331_s1 + $0x40] sm:$0xff]  ;;  %v24_v18 = vld [vmem:[%s331_s1 + $0x38] sm:$0xff]  ;;  %v39_v19 = vld [vmem:[%s331_s1 + $0xb0] sm:$0xff]  ;;  %s134_s29 = sshll.u32 %s201_s28, 4  ;;  %s135_s29 = int_to_ptr.vmem [resolvable:$true] %s134_s29 }
   0xf   :  { %156 = vmatpush3.msra.mxu0 %v26_v14  ;;  %v23_v20 = vld [vmem:[%s331_s1 + $0x30] sm:$0xff]  ;;  %v38_v21 = vld [vmem:[%s331_s1 + $0xa8] sm:$0xff]  ;;  %v37_v23 = vld [vmem:[%s331_s1 + $0xa0] sm:$0xff]  ;;  %p184_p1 = scmp.lt.s32.totalorder %s135_s29, %s135_s29 }
  0x10   :  { %157 = vmatprep.subr.mxu0 %v41_v15  ;;  %v22_v22 = vld [vmem:[%s331_s1 + $0x28] sm:$0xff]  ;;  %v21_v24 = vld [vmem:[%s331_s1 + $0x20] sm:$0xff]  ;;  %v36_v25 = vld [vmem:[%s331_s1 + $0x98] sm:$0xff] }
  0x11   :  { %158 = vmatpush3.msra.mxu0 %v25_v16  ;;  %v20_v26 = vld [vmem:[%s331_s1 + $0x18] sm:$0xff]  ;;  %v35_v27 = vld [vmem:[%s331_s1 + $0x90] sm:$0xff]  ;;  %v34_v29 = vld [vmem:[%s331_s1 + $0x88] sm:$0xff] }
  0x12   :  { %159 = vmatprep.subr.mxu0 %v40_v17  ;;  %v19_v28 = vld [vmem:[%s331_s1 + $0x10] sm:$0xff]  ;;  %v18_v30 = vld [vmem:[%s331_s1 + $0x8] sm:$0xff]  ;;  %v33_v31 = vld [vmem:[%s331_s1 + $0x80] sm:$0xff] }
  0x13   :  { %160 = vmatpush3.msra.mxu0 %v24_v18  ;;  %v17_v32 = vld [vmem:[%s331_s1] sm:$0xff]  ;;  %s179_s1 = scalar_lea.vmem %s135_s29, 128 }
  0x14   :  { %161 = vmatprep.subr.mxu0 %v39_v19  ;;  %v15_v33 = vld [vmem:[%s330_s0] sm:$0xff]  ;;  %p180_p0 = scmp.ne.s32.totalorder %s135_s29, %s179_s1  ;;  %p185_p2 = scmp.lt.s32.totalorder %s179_s1, %s179_s1 }
  0x15   :  { %162 = vmatpush3.msra.mxu0 %v23_v20  ;;  %v142_v35 = vld [vmem:[%s332_s2] ss:$0 sm:$0xff] }
  0x16   :  { %163 = vmatprep.subr.mxu0 %v38_v21  ;;  %p186_p3 = por %p185_p2, %p184_p1 }
  0x17   :  { %164 = vmatpush3.msra.mxu0 %v22_v22 }
  0x18   :  { %165 = vmatprep.subr.mxu0 %v37_v23  ;;  %p187_p4 = pnand %p186_p3, %p180_p0 }
  0x19   :  { %166 = vmatpush3.msra.mxu0 %v21_v24 }
  0x1a   :  { %167 = vmatprep.subr.mxu0 %v36_v25 }
  0x1b   :  { %168 = vmatpush3.msra.mxu0 %v20_v26 }
  0x1c   :  { %169 = vmatprep.subr.mxu0 %v35_v27 }
  0x1d   :  { %170 = vmatpush3.msra.mxu0 %v19_v28 }
  0x1e   :  { %171 = vmatprep.subr.mxu0 %v34_v29 }
  0x1f   :  { %172 = vmatpush3.msra.mxu0 %v18_v30 }
  0x20   :  { %173 = vmatprep.subr.mxu0 %v33_v31 }
  0x21   :  { %174 = vmatpush3.msra.mxu0 %v17_v32 }
  0x22   :  { %121 = vmatmul.mubr.f32.vlgmr.msra.gmra.mxu0 %v15_v33 }
  0xe2   :  { %v175_v34 = vpop.f32.mrf.mxu0 }
  0xe4   :  { %v176_v36 = vpop.f32.mrf.mxu0 }
  0xe5   :  { %v177_v37 = vadd.f32 %v176_v36, %v175_v34 }
  0xe7   :  { %v123_v38 = vadd.f32 %v177_v37, %v142_v35 }
  0xe9   :  { %127 = vst.msk [vmem:[#allocation2] sm:$0xff] %vm126_vm0, %v123_v38 }
  0xea   :  { %190 = shalt.err (!%p187_p4)
}
  0xeb   :  { %137 = dma.vmem_to_hbm [thread:$0]  %s135_s29, 128, %s333_s3, [#allocation3]  }
  0xec   :  { %199 = dma.done.wait [#allocation3], 128  }
  0xed   :  { %200 = vsyncadd [#allocation3], 4294967168 }
  0xee   :  { %141 = vsyncpa [#allocation3], 1 }

</bundles_post_ra>
